<compile_context>
chip_gen: v6e
topology: v6e:2x2x1
jax: 0.10.0
libtpu: 0.0.40
codegen_flags: <defaults>
</compile_context>

<pallas_src>
import jax
import jax.numpy as jnp
from jax import lax
from jax.experimental import pallas as pl
from jax.experimental.pallas import tpu as pltpu


def _round_up(x, m):
    return ((x + m - 1) // m) * m


# ---------------------------------------------------------------------------
# Phase 1: projections + normalization (+ 1/temperature and row-validity mask
# folded into the per-row scale)
# ---------------------------------------------------------------------------
def _project_kernel(inv_sqrt_t, m_actual, tb, mask_rows):
    def kernel(nc_ref, ee_ref, wn_ref, bn_ref, we_ref, be_ref,
               nhat_ref, ehat_ref, absin_ref):
        nodes_map = jnp.dot(nc_ref[...], wn_ref[...],
                            preferred_element_type=jnp.float32) + bn_ref[...]
        edges_map = jnp.dot(ee_ref[...], we_ref[...],
                            preferred_element_type=jnp.float32) + be_ref[...]

        n_sq = jnp.sum(nodes_map * nodes_map, axis=-1, keepdims=True)
        e_sq = jnp.sum(edges_map * edges_map, axis=-1, keepdims=True)
        # rsqrt runs on the EUP slot; the guard keeps exactly-zero rows at 0
        # instead of producing NaN (0 * inf).
        n_scale = jnp.where(n_sq > 0.0, lax.rsqrt(n_sq), 0.0) * inv_sqrt_t
        e_scale = jnp.where(e_sq > 0.0, lax.rsqrt(e_sq), 0.0) * inv_sqrt_t

        if mask_rows:
            # Zero out padded rows by folding the validity mask into the
            # scale -- one (tb, 1) compare per row tile, instead of two
            # (tm, tn) multiplies per similarity tile in phase 2.
            row0 = pl.program_id(0) * tb
            valid = (row0 + lax.broadcasted_iota(jnp.int32, (tb, 1), 0)
                     < m_actual).astype(jnp.float32)
            n_scale = n_scale * valid
            e_scale = e_scale * valid

        n_hat = nodes_map * n_scale          # valid row k has norm 1/sqrt(t)
        e_hat = edges_map * e_scale

        nhat_ref[...] = n_hat.astype(nhat_ref.dtype)
        ehat_ref[...] = e_hat.astype(ehat_ref.dtype)
        # |cos| / t for the numerator, kept in f32.
        absin_ref[...] = jnp.abs(jnp.sum(n_hat * e_hat, axis=-1,
                                         keepdims=True))
    return kernel


# ---------------------------------------------------------------------------
# Phase 2: tiled M x M similarity, exp, row-sum / col-sum accumulation.
# No masking: padded rows/cols of n_hat / e_hat are exactly zero, so they
# contribute exactly exp(-|0|) = 1 per element; corrected in the epilogue.
# ---------------------------------------------------------------------------
def _infonce_tile_kernel():
    def kernel(nhat_ref, ehat_ref, rowsum_ref, colpart_ref):
        j = pl.program_id(1)

        @pl.when(j == 0)
        def _():
            rowsum_ref[...] = jnp.zeros_like(rowsum_ref)

        # Contract over the shared map dim; no [D, tn] transpose materialized.
        mat = lax.dot_general(
            nhat_ref[...], ehat_ref[...],
            dimension_numbers=(((1,), (1,)), ((), ())),
            preferred_element_type=jnp.float32)              # [tm, tn]
        mi = jnp.exp(-jnp.abs(mat))                          # 1/t already folded

        rowsum_ref[...] += jnp.sum(mi, axis=1, keepdims=True)
        colpart = jnp.sum(mi, axis=0, keepdims=True)          # [1, tn]
        colpart_ref[...] = colpart.reshape(colpart_ref.shape)

    return kernel


# ---------------------------------------------------------------------------
# Wrapper
# ---------------------------------------------------------------------------
def contrast_forward(nodes_embedding, edges_embedding, edge_index, params,
                     temperature=1.0, similarity_dtype=jnp.float32):
    """Forward of Contrast (InfoNCE) with the hot path in Pallas."""
    w_node, b_node, w_edge, b_edge = params

    # index_select + chunk(2, dim=0) + cat(dim=-1) -- stays in XLA (gather).
    idx = edge_index.reshape(-1)
    sel = jnp.take(nodes_embedding, idx, axis=0)                 # [2M, E]
    m = edge_index.shape[1]
    nodes_concat = jnp.concatenate([sel[:m], sel[m:]], axis=-1)  # [M, 2E]

    M = m
    E2 = nodes_concat.shape[1]
    E = edges_embedding.shape[1]
    D = w_node.shape[1]

    # Tiling: 128-aligned (v5e MXU), 256 for larger problems (v6e/v7x).
    tile = 256 if M > 128 else 128
    m_pad = _round_up(M, tile)
    tm = tn = tb = tile
    pad = m_pad - M

    nc_p = jnp.pad(nodes_concat.astype(jnp.float32), ((0, pad), (0, 0)))
    ee_p = jnp.pad(edges_embedding.astype(jnp.float32), ((0, pad), (0, 0)))
    wn = w_node.astype(jnp.float32)
    we = w_edge.astype(jnp.float32)
    bn = b_node.reshape(1, D).astype(jnp.float32)
    be = b_edge.reshape(1, D).astype(jnp.float32)

    inv_sqrt_t = float(1.0 / (float(temperature) ** 0.5))

    # ---- phase 1: projections + normalization -----------------------------
    n_hat, e_hat, absin = pl.pallas_call(
        _project_kernel(inv_sqrt_t, M, tb, pad > 0),
        out_shape=(
            jax.ShapeDtypeStruct((m_pad, D), similarity_dtype),
            jax.ShapeDtypeStruct((m_pad, D), similarity_dtype),
            jax.ShapeDtypeStruct((m_pad, 1), jnp.float32),
        ),
        grid=(m_pad // tb,),
        in_specs=[
            pl.BlockSpec((tb, E2), lambda i: (i, 0)),
            pl.BlockSpec((tb, E), lambda i: (i, 0)),
            pl.BlockSpec((E2, D), lambda i: (0, 0)),
            pl.BlockSpec((1, D), lambda i: (0, 0)),
            pl.BlockSpec((E, D), lambda i: (0, 0)),
            pl.BlockSpec((1, D), lambda i: (0, 0)),
        ],
        out_specs=(
            pl.BlockSpec((tb, D), lambda i: (i, 0)),
            pl.BlockSpec((tb, D), lambda i: (i, 0)),
            pl.BlockSpec((tb, 1), lambda i: (i, 0)),
        ),
        compiler_params=pltpu.CompilerParams(
            dimension_semantics=("parallel",),
            vmem_limit_bytes=32 * 1024 * 1024),
    )(nc_p, ee_p, wn, bn, we, be)

    # ---- phase 2: tiled M x M similarity + partial sums --------------------
    num_i = m_pad // tm
    num_j = m_pad // tn
    rowsum, colpart = pl.pallas_call(
        _infonce_tile_kernel(),
        out_shape=(
            jax.ShapeDtypeStruct((m_pad, 1), jnp.float32),
            jax.ShapeDtypeStruct((num_i, 1, m_pad), jnp.float32),
        ),
        grid=(num_i, num_j),
        in_specs=[
            pl.BlockSpec((tm, D), lambda i, j: (i, 0)),
            pl.BlockSpec((tn, D), lambda i, j: (j, 0)),
        ],
        out_specs=(
            pl.BlockSpec((tm, 1), lambda i, j: (i, 0)),
            pl.BlockSpec((1, 1, tn), lambda i, j: (i, 0, j)),
        ),
        compiler_params=pltpu.CompilerParams(
            dimension_semantics=("parallel", "arbitrary"),
            vmem_limit_bytes=32 * 1024 * 1024),
    )(n_hat, e_hat)

    # O(M) epilogue: reduce per-row-tile column partials, remove the constant
    # contribution of the `pad` zero rows/cols (exp(-|0|) = 1 each), and
    # assemble the loss.
    colsum = jnp.sum(colpart, axis=(0, 1))[:M]             # MI_total.sum(dim=0)
    denom = rowsum[:M, 0] + colsum - 2.0 * pad              # + .sum(dim=1)
    loss = absin[:M, 0] - jnp.log(2.0) + jnp.log(denom)     # -log(2*MI/denom)
    return loss


# ---------------------------------------------------------------------------
# Pure-JAX reference mirroring the PyTorch module
# ---------------------------------------------------------------------------
def _reference(nodes_embedding, edges_embedding, edge_index, params, t=1.0):
    w_node, b_node, w_edge, b_edge = params
    idx = edge_index.reshape(-1)
    sel = jnp.take(nodes_embedding, idx, axis=0)
    m = edge_index.shape[1]
    nodes_concat = jnp.concatenate([sel[:m], sel[m:]], axis=-1)
    nodes_map = nodes_concat @ w_node + b_node
    edges_map = edges_embedding @ w_edge + b_edge
    nn_ = jnp.linalg.norm(nodes_map, axis=-1)
    en_ = jnp.linalg.norm(edges_map, axis=-1)
    inner = jnp.sum(nodes_map * edges_map, axis=-1) / (nn_ * en_)
    mat = (nodes_map @ edges_map.T) / (nn_[:, None] * en_[None, :])
    mi = jnp.exp(-jnp.abs(inner) / t)
    mi_total = jnp.exp(-jnp.abs(mat) / t)
    prop = 2 * mi / (mi_total.sum(0) + mi_total.sum(1))
    return -jnp.log(prop)


def _make_inputs(key, num_nodes, num_edges, embedding_dim, map_dim):
    k1, k2, k3, k4, k5, k6, k7 = jax.random.split(key, 7)
    nodes_embedding = jax.random.normal(k1, (num_nodes, embedding_dim),
                                        jnp.float32)
    edges_embedding = jax.random.normal(k2, (num_edges, embedding_dim),
                                        jnp.float32)
    edge_index = jax.random.randint(k3, (2, num_edges), 0, num_nodes,
                                    dtype=jnp.int32)
    w_node = jax.random.normal(k4, (embedding_dim * 2, map_dim),
                               jnp.float32) * 0.1
    b_node = jax.random.normal(k5, (map_dim,), jnp.float32) * 0.1
    w_edge = jax.random.normal(k6, (embedding_dim, map_dim),
                               jnp.float32) * 0.1
    b_edge = jax.random.normal(k7, (map_dim,), jnp.float32) * 0.1
    return nodes_embedding, edges_embedding, edge_index, \
        (w_node, b_node, w_edge, b_edge)


if __name__ == "__main__":
    embedding_dim = 32
    map_dim = 32
    key = jax.random.PRNGKey(0)
    ka, kb = jax.random.split(key)

    # --- Test A: original small config (single tile, f32) ------------------
    ne, ee, ei, params = _make_inputs(ka, num_nodes=16, num_edges=8,
                                      embedding_dim=embedding_dim,
                                      map_dim=map_dim)
    loss_a = contrast_forward(ne, ee, ei, params, temperature=1.0)
    jax.block_until_ready(loss_a)
    ref_a = _reference(ne, ee, ei, params, 1.0)
    assert loss_a.shape == (8,)
    assert jnp.allclose(loss_a, ref_a, atol=1e-4, rtol=1e-4)

    # --- Test B: multi-tile grid (300 edges -> padded to 512, 2x2 tiles) ----
    ne, ee, ei, params = _make_inputs(kb, num_nodes=64, num_edges=300,
                                      embedding_dim=embedding_dim,
                                      map_dim=map_dim)
    loss_b = contrast_forward(ne, ee, ei, params, temperature=0.7)
    jax.block_until_ready(loss_b)
    ref_b = _reference(ne, ee, ei, params, 0.7)
    assert loss_b.shape == (300,)
    assert jnp.allclose(loss_b, ref_b, atol=1e-3, rtol=1e-3)

    # --- Test C: bf16 similarity-matmul path (looser tolerance) -------------
    loss_c = contrast_forward(ne, ee, ei, params, temperature=0.7,
                              similarity_dtype=jnp.bfloat16)
    jax.block_until_ready(loss_c)
    assert loss_c.shape == (300,)
    assert jnp.allclose(loss_c, ref_b, atol=3e-2, rtol=3e-2)

    print("KERNEL_OK")
</pallas_src>

<mosaic_0001>
module attributes {stable_mosaic.version = 11 : i64} {
  func.func @kernel(%arg0: i32, %arg1: memref<128x64xf32, #tpu.memory_space<vmem>>, %arg2: memref<128x32xf32, #tpu.memory_space<vmem>>, %arg3: memref<64x32xf32, #tpu.memory_space<vmem>>, %arg4: memref<1x32xf32, #tpu.memory_space<vmem>>, %arg5: memref<32x32xf32, #tpu.memory_space<vmem>>, %arg6: memref<1x32xf32, #tpu.memory_space<vmem>>, %arg7: memref<128x32xf32, #tpu.memory_space<vmem>>, %arg8: memref<128x32xf32, #tpu.memory_space<vmem>>, %arg9: memref<128x1xf32, #tpu.memory_space<vmem>>) attributes {dimension_semantics = [#tpu.dimension_semantics<parallel>], iteration_bounds = array<i64: 1>, scalar_prefetch = 0 : i64, scratch_operands = 0 : i64, tpu.core_type = #tpu.core_type<tc>, window_params = [{transform_indices = @transform_0, window_bounds = array<i64: 128, 64>}, {transform_indices = @transform_1, window_bounds = array<i64: 128, 32>}, {pipeline_mode = #tpu.pipeline_mode<synchronous>, transform_indices = @transform_2, window_bounds = array<i64: 64, 32>}, {pipeline_mode = #tpu.pipeline_mode<synchronous>, transform_indices = @transform_3, window_bounds = array<i64: 1, 32>}, {pipeline_mode = #tpu.pipeline_mode<synchronous>, transform_indices = @transform_4, window_bounds = array<i64: 32, 32>}, {pipeline_mode = #tpu.pipeline_mode<synchronous>, transform_indices = @transform_5, window_bounds = array<i64: 1, 32>}, {transform_indices = @transform_6, window_bounds = array<i64: 128, 32>}, {transform_indices = @transform_7, window_bounds = array<i64: 128, 32>}, {transform_indices = @transform_8, window_bounds = array<i64: 128, 1>}]} {
    %c0 = arith.constant 0 : index
    %c0_0 = arith.constant 0 : index
    %0 = vector.load %arg1[%c0, %c0_0] : memref<128x64xf32, #tpu.memory_space<vmem>>, vector<128x64xf32>
    %c0_1 = arith.constant 0 : index
    %c0_2 = arith.constant 0 : index
    %1 = vector.load %arg3[%c0_1, %c0_2] : memref<64x32xf32, #tpu.memory_space<vmem>>, vector<64x32xf32>
    %cst = arith.constant dense<0.000000e+00> : vector<128x32xf32>
    %2 = tpu.matmul %0, %1, %cst {dimension_numbers = #tpu.dot_dimension_numbers<[1], [0], [0], [1], [0, 0, 1, 1], [], []>} : vector<128x64xf32>, vector<64x32xf32>, vector<128x32xf32> -> vector<128x32xf32>
    %c0_3 = arith.constant 0 : index
    %c0_4 = arith.constant 0 : index
    %3 = vector.load %arg4[%c0_3, %c0_4] : memref<1x32xf32, #tpu.memory_space<vmem>>, vector<1x32xf32>
    %4 = vector.broadcast %3 : vector<1x32xf32> to vector<128x32xf32>
    %5 = arith.addf %2, %4 : vector<128x32xf32>
    %c0_5 = arith.constant 0 : index
    %c0_6 = arith.constant 0 : index
    %6 = vector.load %arg2[%c0_5, %c0_6] : memref<128x32xf32, #tpu.memory_space<vmem>>, vector<128x32xf32>
    %c0_7 = arith.constant 0 : index
    %c0_8 = arith.constant 0 : index
    %7 = vector.load %arg5[%c0_7, %c0_8] : memref<32x32xf32, #tpu.memory_space<vmem>>, vector<32x32xf32>
    %cst_9 = arith.constant dense<0.000000e+00> : vector<128x32xf32>
    %8 = tpu.matmul %6, %7, %cst_9 {dimension_numbers = #tpu.dot_dimension_numbers<[1], [0], [0], [1], [0, 0, 1, 1], [], []>} : vector<128x32xf32>, vector<32x32xf32>, vector<128x32xf32> -> vector<128x32xf32>
    %c0_10 = arith.constant 0 : index
    %c0_11 = arith.constant 0 : index
    %9 = vector.load %arg6[%c0_10, %c0_11] : memref<1x32xf32, #tpu.memory_space<vmem>>, vector<1x32xf32>
    %10 = vector.broadcast %9 : vector<1x32xf32> to vector<128x32xf32>
    %11 = arith.addf %8, %10 : vector<128x32xf32>
    %12 = arith.mulf %5, %5 : vector<128x32xf32>
    %cst_12 = arith.constant dense<0.000000e+00> : vector<128xf32>
    %13 = vector.multi_reduction <add>, %12, %cst_12 [1] : vector<128x32xf32> to vector<128xf32>
    %14 = vector.shape_cast %13 : vector<128xf32> to vector<128x1xf32>
    %15 = arith.mulf %11, %11 : vector<128x32xf32>
    %cst_13 = arith.constant dense<0.000000e+00> : vector<128xf32>
    %16 = vector.multi_reduction <add>, %15, %cst_13 [1] : vector<128x32xf32> to vector<128xf32>
    %17 = vector.shape_cast %16 : vector<128xf32> to vector<128x1xf32>
    %cst_14 = arith.constant 0.000000e+00 : f32
    %18 = vector.broadcast %cst_14 : f32 to vector<128x1xf32>
    %19 = arith.cmpf ogt, %14, %18 : vector<128x1xf32>
    %20 = math.rsqrt %14 : vector<128x1xf32>
    %cst_15 = arith.constant 0.000000e+00 : f32
    %21 = vector.broadcast %cst_15 : f32 to vector<128x1xf32>
    %22 = arith.select %19, %20, %21 : vector<128x1xi1>, vector<128x1xf32>
    %cst_16 = arith.constant 1.000000e+00 : f32
    %23 = vector.broadcast %cst_16 : f32 to vector<128x1xf32>
    %24 = arith.mulf %22, %23 : vector<128x1xf32>
    %cst_17 = arith.constant 0.000000e+00 : f32
    %25 = vector.broadcast %cst_17 : f32 to vector<128x1xf32>
    %26 = arith.cmpf ogt, %17, %25 : vector<128x1xf32>
    %27 = math.rsqrt %17 : vector<128x1xf32>
    %cst_18 = arith.constant 0.000000e+00 : f32
    %28 = vector.broadcast %cst_18 : f32 to vector<128x1xf32>
    %29 = arith.select %26, %27, %28 : vector<128x1xi1>, vector<128x1xf32>
    %cst_19 = arith.constant 1.000000e+00 : f32
    %30 = vector.broadcast %cst_19 : f32 to vector<128x1xf32>
    %31 = arith.mulf %29, %30 : vector<128x1xf32>
    %c128_i32 = arith.constant 128 : i32
    %32 = arith.muli %arg0, %c128_i32 : i32
    %33 = tpu.iota {dimensions = array<i32: 0>} : vector<128x1xi32>
    %34 = vector.broadcast %32 : i32 to vector<128x1xi32>
    %35 = arith.addi %34, %33 : vector<128x1xi32>
    %c8_i32 = arith.constant 8 : i32
    %36 = vector.broadcast %c8_i32 : i32 to vector<128x1xi32>
    %37 = arith.cmpi slt, %35, %36 : vector<128x1xi32>
    %38 = arith.extui %37 : vector<128x1xi1> to vector<128x1xi32>
    %39 = arith.sitofp %38 : vector<128x1xi32> to vector<128x1xf32>
    %40 = arith.mulf %24, %39 : vector<128x1xf32>
    %41 = arith.mulf %31, %39 : vector<128x1xf32>
    %42 = vector.broadcast %40 : vector<128x1xf32> to vector<128x32xf32>
    %43 = arith.mulf %5, %42 : vector<128x32xf32>
    %44 = vector.broadcast %41 : vector<128x1xf32> to vector<128x32xf32>
    %45 = arith.mulf %11, %44 : vector<128x32xf32>
    %c0_20 = arith.constant 0 : index
    %c0_21 = arith.constant 0 : index
    %46 = vector.load %arg7[%c0_20, %c0_21] : memref<128x32xf32, #tpu.memory_space<vmem>>, vector<128x32xf32>
    tpu.vector_store %arg7[%c0_20, %c0_21], %43 {strides = array<i32>} : memref<128x32xf32, #tpu.memory_space<vmem>>, vector<128x32xf32>,
    %c0_22 = arith.constant 0 : index
    %c0_23 = arith.constant 0 : index
    %47 = vector.load %arg8[%c0_22, %c0_23] : memref<128x32xf32, #tpu.memory_space<vmem>>, vector<128x32xf32>
    tpu.vector_store %arg8[%c0_22, %c0_23], %45 {strides = array<i32>} : memref<128x32xf32, #tpu.memory_space<vmem>>, vector<128x32xf32>,
    %48 = arith.mulf %43, %45 : vector<128x32xf32>
    %cst_24 = arith.constant dense<0.000000e+00> : vector<128xf32>
    %49 = vector.multi_reduction <add>, %48, %cst_24 [1] : vector<128x32xf32> to vector<128xf32>
    %50 = vector.shape_cast %49 : vector<128xf32> to vector<128x1xf32>
    %51 = math.absf %50 : vector<128x1xf32>
    %c0_25 = arith.constant 0 : index
    %c0_26 = arith.constant 0 : index
    %52 = vector.load %arg9[%c0_25, %c0_26] : memref<128x1xf32, #tpu.memory_space<vmem>>, vector<128x1xf32>
    tpu.vector_store %arg9[%c0_25, %c0_26], %51 {strides = array<i32>} : memref<128x1xf32, #tpu.memory_space<vmem>>, vector<128x1xf32>,
    return
  }
  func.func @transform_0(%arg0: i32) -> (i32, i32) {
    %c0_i32 = arith.constant 0 : i32
    %c0_i32_0 = arith.constant 0 : i32
    return %arg0, %c0_i32 : i32, i32
  }
  func.func @transform_1(%arg0: i32) -> (i32, i32) {
    %c0_i32 = arith.constant 0 : i32
    %c0_i32_0 = arith.constant 0 : i32
    return %arg0, %c0_i32 : i32, i32
  }
  func.func @transform_2(%arg0: i32) -> (i32, i32) {
    %c0_i32 = arith.constant 0 : i32
    %c0_i32_0 = arith.constant 0 : i32
    %c0_i32_1 = arith.constant 0 : i32
    return %c0_i32, %c0_i32_0 : i32, i32
  }
  func.func @transform_3(%arg0: i32) -> (i32, i32) {
    %c0_i32 = arith.constant 0 : i32
    %c0_i32_0 = arith.constant 0 : i32
    %c0_i32_1 = arith.constant 0 : i32
    return %c0_i32, %c0_i32_0 : i32, i32
  }
  func.func @transform_4(%arg0: i32) -> (i32, i32) {
    %c0_i32 = arith.constant 0 : i32
    %c0_i32_0 = arith.constant 0 : i32
    %c0_i32_1 = arith.constant 0 : i32
    return %c0_i32, %c0_i32_0 : i32, i32
  }
  func.func @transform_5(%arg0: i32) -> (i32, i32) {
    %c0_i32 = arith.constant 0 : i32
    %c0_i32_0 = arith.constant 0 : i32
    %c0_i32_1 = arith.constant 0 : i32
    return %c0_i32, %c0_i32_0 : i32, i32
  }
  func.func @transform_6(%arg0: i32) -> (i32, i32) {
    %c0_i32 = arith.constant 0 : i32
    %c0_i32_0 = arith.constant 0 : i32
    return %arg0, %c0_i32 : i32, i32
  }
  func.func @transform_7(%arg0: i32) -> (i32, i32) {
    %c0_i32 = arith.constant 0 : i32
    %c0_i32_0 = arith.constant 0 : i32
    return %arg0, %c0_i32 : i32, i32
  }
  func.func @transform_8(%arg0: i32) -> (i32, i32) {
    %c0_i32 = arith.constant 0 : i32
    %c0_i32_0 = arith.constant 0 : i32
    return %arg0, %c0_i32 : i32, i32
  }
}

</mosaic_0001>

<bundles_post_ra>
// kernel: tpu_custom_call.1
= control target key start
LH: loop header
LB: loop body
LE: loop exit
PB: predicated region body
PF: predicated region fallthrough
CT: control target
= control target key end

     0   :  { %vm278_vm0 = vcmask 261120   ;;  %vm57_vm1 = vcmask 523264   ;;  %s1995_s2 = inlined_call_operand.vmem [shape: f32[64,32], index: 2, kind: input, shape index: {}]   ;;  %s1996_s4 = inlined_call_operand.vmem [shape: f32[32,32], index: 4, kind: input, shape index: {}]   ;;  %s1997_s1 = inlined_call_operand.vmem [shape: f32[128,32], index: 1, kind: input, shape index: {}]   ;;  %s1998_s0 = inlined_call_operand.vmem [shape: f32[128,64], index: 0, kind: input, shape index: {}]   ;;  %s1999_s5 = inlined_call_operand.vmem [shape: f32[1,32], index: 5, kind: input, shape index: {}]   ;;  %s2000_s3 = inlined_call_operand.vmem [shape: f32[1,32], index: 3, kind: input, shape index: {}]   ;;  %s2001_s7 = inlined_call_operand.vmem [shape: f32[128,32], index: 7, kind: output, shape index: {1}]   ;;  %s2002_s6 = inlined_call_operand.vmem [shape: f32[128,32], index: 6, kind: output, shape index: {0}]   ;;  %s2003_s8 = inlined_call_operand.vmem [shape: f32[128,1], index: 8, kind: output, shape index: {2}]  }
   0x1   :  { %v49_v0 = vld [vmem:[%s1995_s2 + $0x38] sm:$0xff]  ;;  %v48_v2 = vld [vmem:[%s1995_s2 + $0x30] sm:$0xff]  ;;  %v47_v4 = vld [vmem:[%s1995_s2 + $0x28] sm:$0xff] }
   0x2   :  { %v270_v1 = vld [vmem:[%s1996_s4 + $0x18] sm:$0xff]  ;;  %1062 = vmatprep.subr.mxu0 %v49_v0  ;;  %v269_v3 = vld [vmem:[%s1996_s4 + $0x10] sm:$0xff]  ;;  %v268_v5 = vld [vmem:[%s1996_s4 + $0x8] sm:$0xff] }
   0x3   :  { %1102 = vmatprep.subr.mxu1 %v270_v1  ;;  %1063 = vmatpush3.msra.mxu0 %v49_v0  ;;  %v46_v6 = vld [vmem:[%s1995_s2 + $0x20] sm:$0xff]  ;;  %v45_v9 = vld [vmem:[%s1995_s2 + $0x18] sm:$0xff]  ;;  %v252_v10 = vld [vmem:[%s1997_s1 + $0x8] sm:$0xff] }
   0x4   :  { %1103 = vmatpush3.msra.mxu1 %v270_v1  ;;  %1064 = vmatprep.subr.mxu0 %v48_v2  ;;  %v267_v7 = vld [vmem:[%s1996_s4] sm:$0xff]  ;;  %v44_v11 = vld [vmem:[%s1995_s2 + $0x10] sm:$0xff]  ;;  %v43_v14 = vld [vmem:[%s1995_s2 + $0x8] sm:$0xff] }
   0x5   :  { %1104 = vmatprep.subr.mxu1 %v269_v3  ;;  %1065 = vmatpush3.msra.mxu0 %v48_v2  ;;  %v251_v8 = vld [vmem:[%s1997_s1] sm:$0xff]  ;;  %v253_v12 = vld [vmem:[%s1997_s1 + $0x10] sm:$0xff]  ;;  %v254_v15 = vld [vmem:[%s1997_s1 + $0x18] sm:$0xff] }
   0x6   :  { %1105 = vmatpush3.msra.mxu1 %v269_v3  ;;  %1066 = vmatprep.subr.mxu0 %v47_v4  ;;  %v26_v13 = vld [vmem:[%s1998_s0] sm:$0xff]  ;;  %v27_v18 = vld [vmem:[%s1998_s0 + $0x8] sm:$0xff]  ;;  %v28_v20 = vld [vmem:[%s1998_s0 + $0x10] sm:$0xff] }
   0x7   :  { %1106 = vmatprep.subr.mxu1 %v268_v5  ;;  %1067 = vmatpush3.msra.mxu0 %v47_v4  ;;  %v42_v16 = vld [vmem:[%s1995_s2] sm:$0xff]  ;;  %v256_v19 = vld [vmem:[%s1997_s1 + $0x28] sm:$0xff]  ;;  %v257_v21 = vld [vmem:[%s1997_s1 + $0x30] sm:$0xff] }
   0x8   :  { %1107 = vmatpush3.msra.mxu1 %v268_v5  ;;  %1068 = vmatprep.subr.mxu0 %v46_v6  ;;  %v255_v17 = vld [vmem:[%s1997_s1 + $0x20] sm:$0xff]  ;;  %v29_v22 = vld [vmem:[%s1998_s0 + $0x18] sm:$0xff]  ;;  %v31_v26 = vld [vmem:[%s1998_s0 + $0x28] sm:$0xff] }
   0x9   :  { %1108 = vmatprep.subr.mxu1 %v267_v7  ;;  %1069 = vmatpush3.msra.mxu0 %v46_v6  ;;  %v258_v23 = vld [vmem:[%s1997_s1 + $0x38] sm:$0xff]  ;;  %v30_v24 = vld [vmem:[%s1998_s0 + $0x20] sm:$0xff]  ;;  %v260_v27 = vld [vmem:[%s1997_s1 + $0x48] sm:$0xff] }
   0xa   :  { %1109 = vmatpush3.msra.mxu1 %v267_v7  ;;  %1110 = vmatprep.mubr.msk.f32.mxu1 %vm278_vm0, %v251_v8  ;;  %v259_v25 = vld [vmem:[%s1997_s1 + $0x40] sm:$0xff]  ;;  %v32_v28 = vld [vmem:[%s1998_s0 + $0x30] sm:$0xff]  ;;  %v33_v30 = vld [vmem:[%s1998_s0 + $0x38] sm:$0xff] }
   0xb   :  { %1070 = vmatprep.subr.mxu0 %v45_v9  ;;  %1111 = vmatmul.mubr.msk.f32.vlgmr.msra.gmra.mxu1 %vm278_vm0, %v252_v10  ;;  %v261_v29 = vld [vmem:[%s1997_s1 + $0x50] sm:$0xff]  ;;  %v262_v31 = vld [vmem:[%s1997_s1 + $0x58] sm:$0xff]  ;;  %v34_v32 = vld [vmem:[%s1998_s0 + $0x40] sm:$0xff] }
   0xc   :  { %1071 = vmatpush3.msra.mxu0 %v45_v9  ;;  %1113 = vmatprep.mubr.msk.f32.mxu1 %vm278_vm0, %v253_v12  ;;  %v263_v33 = vld [vmem:[%s1997_s1 + $0x60] sm:$0xff]  ;;  %v35_v34 = vld [vmem:[%s1998_s0 + $0x48] sm:$0xff]  ;;  %v36_v36 = vld [vmem:[%s1998_s0 + $0x50] sm:$0xff] }
   0xd   :  { %1072 = vmatprep.subr.mxu0 %v44_v11  ;;  %1078 = vmatprep.mubr.msk.f32.mxu0 %vm57_vm1, %v26_v13  ;;  %v264_v35 = vld [vmem:[%s1997_s1 + $0x68] sm:$0xff]  ;;  %v265_v37 = vld [vmem:[%s1997_s1 + $0x70] sm:$0xff]  ;;  %v37_v38 = vld [vmem:[%s1998_s0 + $0x58] sm:$0xff] }
   0xe   :  { %1073 = vmatpush3.msra.mxu0 %v44_v11  ;;  %v266_v39 = vld [vmem:[%s1997_s1 + $0x78] sm:$0xff]  ;;  %v38_v40 = vld [vmem:[%s1998_s0 + $0x60] sm:$0xff]  ;;  %v39_v41 = vld [vmem:[%s1998_s0 + $0x68] sm:$0xff] }
   0xf   :  { %1074 = vmatprep.subr.mxu0 %v43_v14  ;;  %1114 = vmatmul.mubr.msk.f32.gmra.mxu1 %vm278_vm0, %v254_v15  ;;  %v40_v42 = vld [vmem:[%s1998_s0 + $0x70] sm:$0xff]  ;;  %v41_v43 = vld [vmem:[%s1998_s0 + $0x78] sm:$0xff]  ;;  %v1410_v44 = vld [vmem:[%s1999_s5] ss:$0 sm:$0xff] }
  0x10   :  { %1075 = vmatpush3.msra.mxu0 %v43_v14  ;;  %1116 = vmatprep.mubr.msk.f32.mxu1 %vm278_vm0, %v255_v17  ;;  %v1426_v52 = vld [vmem:[%s2000_s3] ss:$0 sm:$0xff] }
  0x11   :  { %1076 = vmatprep.subr.mxu0 %v42_v16 }
  0x12   :  { %1077 = vmatpush3.msra.mxu0 %v42_v16 }
  0x13   :  { %1079 = vmatmul.mubr.msk.f32.vlgmr.msra.gmra.mxu0 %vm57_vm1, %v27_v18  ;;  %1117 = vmatmul.mubr.msk.f32.gmra.mxu1 %vm278_vm0, %v256_v19 }
  0x14   :  { %1081 = vmatprep.mubr.msk.f32.mxu0 %vm57_vm1, %v28_v20  ;;  %1119 = vmatprep.mubr.msk.f32.mxu1 %vm278_vm0, %v257_v21 }
  0x17   :  { %1082 = vmatmul.mubr.msk.f32.gmra.mxu0 %vm57_vm1, %v29_v22  ;;  %1120 = vmatmul.mubr.msk.f32.gmra.mxu1 %vm278_vm0, %v258_v23 }
  0x18   :  { %1084 = vmatprep.mubr.msk.f32.mxu0 %vm57_vm1, %v30_v24  ;;  %1122 = vmatprep.mubr.msk.f32.mxu1 %vm278_vm0, %v259_v25 }
  0x1b   :  { %1085 = vmatmul.mubr.msk.f32.gmra.mxu0 %vm57_vm1, %v31_v26  ;;  %1123 = vmatmul.mubr.msk.f32.gmra.mxu1 %vm278_vm0, %v260_v27 }
  0x1c   :  { %1087 = vmatprep.mubr.msk.f32.mxu0 %vm57_vm1, %v32_v28  ;;  %1125 = vmatprep.mubr.msk.f32.mxu1 %vm278_vm0, %v261_v29 }
  0x1f   :  { %1088 = vmatmul.mubr.msk.f32.gmra.mxu0 %vm57_vm1, %v33_v30  ;;  %1126 = vmatmul.mubr.msk.f32.gmra.mxu1 %vm278_vm0, %v262_v31 }
  0x20   :  { %1090 = vmatprep.mubr.msk.f32.mxu0 %vm57_vm1, %v34_v32  ;;  %1128 = vmatprep.mubr.msk.f32.mxu1 %vm278_vm0, %v263_v33 }
  0x23   :  { %1091 = vmatmul.mubr.msk.f32.gmra.mxu0 %vm57_vm1, %v35_v34  ;;  %1129 = vmatmul.mubr.msk.f32.gmra.mxu1 %vm278_vm0, %v264_v35 }
  0x24   :  { %1093 = vmatprep.mubr.msk.f32.mxu0 %vm57_vm1, %v36_v36  ;;  %1131 = vmatprep.mubr.msk.f32.mxu1 %vm278_vm0, %v265_v37 }
  0x27   :  { %1094 = vmatmul.mubr.msk.f32.gmra.mxu0 %vm57_vm1, %v37_v38  ;;  %1132 = vmatmul.mubr.msk.f32.gmra.mxu1 %vm278_vm0, %v266_v39 }
  0x28   :  { %1096 = vmatprep.mubr.msk.f32.mxu0 %vm57_vm1, %v38_v40 }
  0x2b   :  { %1097 = vmatmul.mubr.msk.f32.gmra.mxu0 %vm57_vm1, %v39_v41 }
  0x2c   :  { %1099 = vmatprep.mubr.msk.f32.mxu0 %vm57_vm1, %v40_v42 }
  0x2f   :  { %1100 = vmatmul.mubr.msk.f32.gmra.mxu0 %vm57_vm1, %v41_v43 }
  0xcb   :  { %v1112_v45 = vpop.f32.mrf.mxu1 }
  0xcc   :  { %v1413_v46 = vadd.f32 %v1112_v45, %v1410_v44 }
  0xcd   :  { %v1415_v47 = vpop.f32.mrf.mxu1 }
  0xce   :  { %v537_v48 = vmul.f32 %v1413_v46, %v1413_v46 }
  0xcf   :  { %v1115_v49 = vpop.f32.mrf.mxu1 }
  0xd0   :  { %v1420_v50 = vadd.f32 %v1115_v49, %v1410_v44  ;;  %v555_v51 = vsel %vm278_vm0, %v537_v48, 0.0 }
  0xd1   :  { %556 = vadd.xlane.f32.xlu1 %v555_v51  ;;  %v403_v53 = vpop.f32.mrf.mxu1 }
  0xd2   :  { %v1429_v54 = vadd.f32 %v1410_v44, %v403_v53  ;;  %v539_v56 = vmul.f32 %v1420_v50, %v1420_v50 }
  0xd3   :  { %v1080_v55 = vpop.f32.mrf.mxu0  ;;  %v1118_v58 = vpop.f32.mrf.mxu1 }
  0xd4   :  { %v1434_v57 = vadd.f32 %v1080_v55, %v1426_v52  ;;  %v1437_v59 = vadd.f32 %v1118_v58, %v1410_v44  ;;  %v561_v60 = vsel %vm278_vm0, %v539_v56, 0.0  ;;  %v538_v62 = vmul.f32 %v1429_v54, %v1429_v54 }
  0xd5   :  { %v1440_v61 = vpop.f32.mrf.mxu0  ;;  %562 = vadd.xlane.f32.xlu1 %v561_v60  ;;  %v413_v63 = vpop.f32.mrf.mxu1 }
  0xd6   :  { %v473_v0 = vmul.f32 %v1434_v57, %v1434_v57  ;;  %v1447_v1 = vadd.f32 %v1410_v44, %v413_v63  ;;  %v558_v2 = vsel %vm278_vm0, %v538_v62, 0.0  ;;  %v541_v4 = vmul.f32 %v1437_v59, %v1437_v59 }
  0xd7   :  { %v1083_v3 = vpop.f32.mrf.mxu0  ;;  %559 = vadd.xlane.f32.xlu0 %v558_v2  ;;  %v1121_v6 = vpop.f32.mrf.mxu1 }
  0xd8   :  { %v1453_v5 = vadd.f32 %v1083_v3, %v1426_v52  ;;  %v567_v7 = vsel %vm278_vm0, %v541_v4, 0.0  ;;  %v1457_v8 = vadd.f32 %v1121_v6, %v1410_v44  ;;  %v491_v9 = vsel %vm278_vm0, %v473_v0, 0.0 }
  0xd9   :  { %v182_v10 = vpop.f32.mrf.mxu0  ;;  %568 = vadd.xlane.f32.xlu1 %v567_v7  ;;  %v423_v11 = vpop.f32.mrf.mxu1  ;;  %v540_v13 = vmul.f32 %v1447_v1, %v1447_v1 }
  0xda   :  { %v475_v12 = vmul.f32 %v1453_v5, %v1453_v5  ;;  %v1465_v14 = vadd.f32 %v1426_v52, %v182_v10  ;;  %v543_v15 = vmul.f32 %v1457_v8, %v1457_v8  ;;  %v1474_v21 = vadd.f32 %v1410_v44, %v423_v11 }
  0xdb   :  { %v1086_v16 = vpop.f32.mrf.mxu0  ;;  %492 = vadd.xlane.f32.xlu0 %v491_v9  ;;  %v1124_v18 = vpop.f32.mrf.mxu1  ;;  %v564_v22 = vsel %vm278_vm0, %v540_v13, 0.0 }
  0xdc   :  { %v497_v17 = vsel %vm278_vm0, %v475_v12, 0.0  ;;  %v1471_v19 = vadd.f32 %v1124_v18, %v1410_v44  ;;  %v573_v24 = vsel %vm278_vm0, %v543_v15, 0.0  ;;  %v474_v26 = vmul.f32 %v1465_v14, %v1465_v14 }
  0xdd   :  { %v192_v20 = vpop.f32.mrf.mxu0  ;;  %498 = vadd.xlane.f32.xlu1 %v497_v17  ;;  %v433_v23 = vpop.f32.mrf.mxu1  ;;  %v1486_v30 = vadd.f32 %v1086_v16, %v1426_v52  ;;  %v542_v32 = vmul.f32 %v1474_v21, %v1474_v21 }
  0xde   :  { %v1479_v25 = vadd.f32 %v1426_v52, %v192_v20  ;;  %v545_v27 = vmul.f32 %v1471_v19, %v1471_v19  ;;  %v494_v33 = vsel %vm278_vm0, %v474_v26, 0.0  ;;  %v1500_v40 = vadd.f32 %v1410_v44, %v433_v23 }
  0xdf   :  { %v1089_v28 = vpop.f32.mrf.mxu0  ;;  %565 = vadd.xlane.f32.xlu0 %v564_v22  ;;  %v1127_v29 = vpop.f32.mrf.mxu1  ;;  %v477_v39 = vmul.f32 %v1486_v30, %v1486_v30  ;;  %v570_v42 = vsel %vm278_vm0, %v542_v32, 0.0 }
  0xe0   :  { %v579_v34 = vsel %vm278_vm0, %v545_v27, 0.0  ;;  %v1493_v35 = vadd.f32 %v1127_v29, %v1410_v44  ;;  %v476_v36 = vmul.f32 %v1479_v25, %v1479_v25  ;;  %v1510_v53 = vadd.f32 %v1089_v28, %v1426_v52 }
  0xe1   :  { %v202_v31 = vpop.f32.mrf.mxu0  ;;  %574 = vadd.xlane.f32.xlu1 %v573_v24  ;;  %v443_v38 = vpop.f32.mrf.mxu1  ;;  %v503_v55 = vsel %vm278_vm0, %v477_v39, 0.0  ;;  %v544_v60 = vmul.f32 %v1500_v40, %v1500_v40 }
  0xe2   :  { %v500_v43 = vsel %vm278_vm0, %v476_v36, 0.0  ;;  %v1505_v45 = vadd.f32 %v1426_v52, %v202_v31  ;;  %v547_v48 = vmul.f32 %v1493_v35, %v1493_v35  ;;  %v479_v2 = vmul.f32 %v1510_v53, %v1510_v53 }
  0xe3   :  { %v1092_v37 = vpop.f32.mrf.mxu0  ;;  %495 = vadd.xlane.f32.xlu0 %v494_v33  ;;  %v1130_v49 = vpop.f32.mrf.mxu1  ;;  %v1524_v3 = vadd.f32 %v1410_v44, %v443_v38  ;;  %v576_v4 = vsel %vm278_vm0, %v544_v60, 0.0 }
  0xe4   :  { %v585_v56 = vsel %vm278_vm0, %v547_v48, 0.0  ;;  %v1515_v58 = vadd.f32 %v1130_v49, %v1410_v44  ;;  %v478_v62 = vmul.f32 %v1505_v45, %v1505_v45  ;;  %v1534_v12 = vadd.f32 %v1092_v37, %v1426_v52 }
  0xe5   :  { %580 = vadd.xlane.f32.xlu1 %v579_v34  ;;  %v212_v41 = vpop.f32.mrf.mxu0  ;;  %v453_v63 = vpop.f32.mrf.mxu1  ;;  %v509_v13 = vsel %vm278_vm0, %v479_v2, 0.0  ;;  %v546_v17 = vmul.f32 %v1524_v3, %v1524_v3 }
  0xe6   :  { %v506_v6 = vsel %vm278_vm0, %v478_v62, 0.0  ;;  %v1529_v7 = vadd.f32 %v1426_v52, %v212_v41  ;;  %v549_v9 = vmul.f32 %v1515_v58, %v1515_v58  ;;  %v481_v22 = vmul.f32 %v1534_v12, %v1534_v12 }
  0xe7   :  { %571 = vadd.xlane.f32.xlu0 %v570_v42  ;;  %v1095_v51 = vpop.f32.mrf.mxu0  ;;  %v1133_v10 = vpop.f32.mrf.mxu1  ;;  %v1548_v23 = vadd.f32 %v1410_v44, %v453_v63  ;;  %v582_v24 = vsel %vm278_vm0, %v546_v17, 0.0 }
  0xe8   :  { %v591_v15 = vsel %vm278_vm0, %v549_v9, 0.0  ;;  %v1539_v16 = vadd.f32 %v1133_v10, %v1410_v44  ;;  %v480_v18 = vmul.f32 %v1529_v7, %v1529_v7  ;;  %v1558_v31 = vadd.f32 %v1095_v51, %v1426_v52 }
  0xe9   :  { %501 = vadd.xlane.f32.xlu1 %v500_v43  ;;  %v222_v0 = vpop.f32.mrf.mxu0  ;;  %v515_v32 = vsel %vm278_vm0, %v481_v22, 0.0  ;;  %v463_v33 = vpop.f32.mrf.mxu1  ;;  %v548_v37 = vmul.f32 %v1548_v23, %v1548_v23 }
  0xea   :  { %v512_v26 = vsel %vm278_vm0, %v480_v18, 0.0  ;;  %v1553_v27 = vadd.f32 %v1426_v52, %v222_v0  ;;  %v551_v28 = vmul.f32 %v1539_v16, %v1539_v16  ;;  %v483_v41 = vmul.f32 %v1558_v31, %v1558_v31 }
  0xeb   :  { %504 = vadd.xlane.f32.xlu0 %v503_v55  ;;  %v1098_v11 = vpop.f32.mrf.mxu0  ;;  %v1572_v42 = vadd.f32 %v1410_v44, %v463_v33  ;;  %v588_v43 = vsel %vm278_vm0, %v548_v37, 0.0  ;;  %v1592_v0 = vadd.f32 %v1410_v44, %v1415_v47  ;;  %v1605_v44 = vadd.f32 %v1426_v52, %v1440_v61 }
  0xec   :  { %v597_v34 = vsel %vm278_vm0, %v551_v28, 0.0  ;;  %v482_v38 = vmul.f32 %v1553_v27, %v1553_v27  ;;  %v521_v55 = vsel %vm278_vm0, %v483_v41, 0.0 }
  0xed   :  { %586 = vadd.xlane.f32.xlu1 %v585_v56  ;;  %v232_v20 = vpop.f32.mrf.mxu0  ;;  %v1583_v56 = vadd.f32 %v1098_v11, %v1426_v52  ;;  %v550_v62 = vmul.f32 %v1572_v42, %v1572_v42  ;;  %v536_v10 = vmul.f32 %v1592_v0, %v1592_v0  ;;  %v472_v17 = vmul.f32 %v1605_v44, %v1605_v44 }
  0xee   :  { %v1563_v36 = vadd.f32 %v1426_v52, %v232_v20  ;;  %v518_v48 = vsel %vm278_vm0, %v482_v38, 0.0 }
  0xef   :  { %577 = vadd.xlane.f32.xlu0 %v576_v4  ;;  %v1101_v29 = vpop.f32.mrf.mxu0  ;;  %v594_v4 = vsel %vm278_vm0, %v550_v62, 0.0  ;;  %v485_v9 = vmul.f32 %v1583_v56, %v1583_v56  ;;  %v488_v18 = vsel %vm278_vm0, %v472_v17, 0.0 }
  0xf0   :  { %v484_v51 = vmul.f32 %v1563_v36, %v1563_v36  ;;  %v1595_v2 = vadd.f32 %v1101_v29, %v1426_v52 }
  0xf1   :  { %507 = vadd.xlane.f32.xlu1 %v506_v6  ;;  %v242_v39 = vpop.f32.mrf.mxu0  ;;  %v527_v47 = vsel %vm278_vm0, %v485_v9, 0.0 }
  0xf2   :  { %v1577_v49 = vadd.f32 %v1426_v52, %v242_v39  ;;  %v524_v60 = vsel %vm278_vm0, %v484_v51, 0.0  ;;  %v487_v11 = vmul.f32 %v1595_v2, %v1595_v2 }
  0xf3   :  { %510 = vadd.xlane.f32.xlu0 %v509_v13  ;;  %v552_v13 = vsel %vm278_vm0, %v536_v10, 0.0 }
  0xf4   :  { %v486_v63 = vmul.f32 %v1577_v49, %v1577_v49 }
  0xf5   :  { %592 = vadd.xlane.f32.xlu1 %v591_v15  ;;  %v533_v15 = vsel %vm278_vm0, %v487_v11, 0.0 }
  0xf6   :  { %v530_v6 = vsel %vm278_vm0, %v486_v63, 0.0 }
  0xf7   :  { %583 = vadd.xlane.f32.xlu0 %v582_v24 }
  0xf9   :  { %513 = vadd.xlane.f32.xlu1 %v512_v26 }
  0xfb   :  { %516 = vadd.xlane.f32.xlu0 %v515_v32 }
  0xfd   :  { %598 = vadd.xlane.f32.xlu1 %v597_v34 }
  0xff   :  { %589 = vadd.xlane.f32.xlu0 %v588_v43 }
 0x101   :  { %519 = vadd.xlane.f32.xlu1 %v518_v48 }
 0x103   :  { %522 = vadd.xlane.f32.xlu0 %v521_v55 }
 0x105   :  { %525 = vadd.xlane.f32.xlu1 %v524_v60 }
 0x107   :  { %595 = vadd.xlane.f32.xlu0 %v594_v4 }
 0x109   :  { %531 = vadd.xlane.f32.xlu1 %v530_v6 }
 0x10b   :  { %528 = vadd.xlane.f32.xlu0 %v527_v47 }
 0x10d   :  { %553 = vadd.xlane.f32.xlu1 %v552_v13 }
 0x10f   :  { %534 = vadd.xlane.f32.xlu0 %v533_v15 }
 0x113   :  { %489 = vadd.xlane.f32.xlu0 %v488_v18 }
 0x15a   :  { %v557_v52 = vpop.xlane.xlu1 %556 }
 0x15b   :  { %1134 = vrsqrt.f32 %v557_v52  ;;  %vm649_vm2 = vcmp.gt.f32.partialorder %v557_v52, 0.0 }
 0x15e   :  { %v563_v61 = vpop.xlane.xlu1 %562 }
 0x15f   :  { %1136 = vrsqrt.f32 %v563_v61  ;;  %vm651_vm3 = vcmp.gt.f32.partialorder %v563_v61, 0.0 }
 0x160   :  { %v560_v20 = vpop.xlane.xlu0 %559 }
 0x161   :  { %1138 = vrsqrt.f32 %v560_v20  ;;  %vm650_vm4 = vcmp.gt.f32.partialorder %v560_v20, 0.0 }
 0x162   :  { %v569_v22 = vpop.xlane.xlu1 %568 }
 0x163   :  { %1140 = vrsqrt.f32 %v569_v22  ;;  %vm653_vm5 = vcmp.gt.f32.partialorder %v569_v22, 0.0 }
 0x164   :  { %v493_v24 = vpop.xlane.xlu0 %492 }
 0x165   :  { %1142 = vrsqrt.f32 %v493_v24  ;;  %vm601_vm6 = vcmp.gt.f32.partialorder %v493_v24, 0.0 }
 0x166   :  { %v499_v26 = vpop.xlane.xlu1 %498 }
 0x167   :  { %1144 = vrsqrt.f32 %v499_v26  ;;  %vm603_vm7 = vcmp.gt.f32.partialorder %v499_v26, 0.0 }
 0x168   :  { %v1135_v28 = vpop.eup %1134  ;;  %v566_v29 = vpop.xlane.xlu0 %565 }
 0x169   :  { %v681_v32 = vsel %vm649_vm2, %v1135_v28, 0.0  ;;  %1146 = vrsqrt.f32 %v566_v29  ;;  %vm652_vm8 = vcmp.gt.f32.partialorder %v566_v29, 0.0 }
 0x16a   :  { %v796_v33 = vmul.f32 0.0, %v681_v32  ;;  %v575_v34 = vpop.xlane.xlu1 %574 }
 0x16b   :  { %1148 = vrsqrt.f32 %v575_v34  ;;  %vm655_vm9 = vcmp.gt.f32.partialorder %v575_v34, 0.0 }
 0x16c   :  { %v1137_v37 = vpop.eup %1136  ;;  %v496_v38 = vpop.xlane.xlu0 %495  ;;  %v828_v39 = vmul.f32 %v796_v33, %v1413_v46 }
 0x16d   :  { %v683_v41 = vsel %vm651_vm3, %v1137_v37, 0.0  ;;  %1150 = vrsqrt.f32 %v496_v38  ;;  %vm602_vm10 = vcmp.gt.f32.partialorder %v496_v38, 0.0 }
 0x16e   :  { %v1139_v43 = vpop.eup %1138  ;;  %v798_v48 = vmul.f32 0.0, %v683_v41  ;;  %v1616_v51 = vpop.xlane.xlu1 %580  ;;  %860 = vst.msk [vmem:[%s2001_s7 + $0x8] sm:$0xff] %vm278_vm0, %v828_v39 }
 0x16f   :  { %v682_v55 = vsel %vm650_vm4, %v1139_v43, 0.0  ;;  %1152 = vrsqrt.f32 %v1616_v51  ;;  %vm657_vm11 = vcmp.gt.f32.partialorder %v1616_v51, 0.0 }
 0x170   :  { %v1141_v60 = vpop.eup %1140  ;;  %v797_v62 = vmul.f32 0.0, %v682_v55  ;;  %v1623_v63 = vpop.xlane.xlu0 %571  ;;  %v830_v46 = vmul.f32 %v798_v48, %v1420_v50 }
 0x171   :  { %v685_v4 = vsel %vm653_vm5, %v1141_v60, 0.0  ;;  %1154 = vrsqrt.f32 %v1623_v63  ;;  %vm654_vm12 = vcmp.gt.f32.partialorder %v1623_v63, 0.0 }
 0x172   :  { %v1143_v6 = vpop.eup %1142  ;;  %v800_v9 = vmul.f32 0.0, %v685_v4  ;;  %v1627_v10 = vpop.xlane.xlu1 %501  ;;  %862 = vst.msk [vmem:[%s2001_s7 + $0x18] sm:$0xff] %vm278_vm0, %v830_v46  ;;  %v1634_v47 = vmul.f32 %v797_v62, %v1429_v54 }
 0x173   :  { %v633_v11 = vsel %vm601_vm6, %v1143_v6, 0.0  ;;  %1156 = vrsqrt.f32 %v1627_v10  ;;  %vm604_vm13 = vcmp.gt.f32.partialorder %v1627_v10, 0.0 }
 0x174   :  { %v1145_v50 = vpop.eup %1144  ;;  %v780_v13 = vmul.f32 0.0, %v633_v11  ;;  %v1637_v15 = vpop.xlane.xlu0 %504  ;;  %v1640_v17 = vmul.f32 %v800_v9, %v1437_v59  ;;  %861 = vst.msk [vmem:[%s2001_s7 + $0x10] sm:$0xff] %vm278_vm0, %v1634_v47 }
 0x175   :  { %v635_v18 = vsel %vm603_vm7, %v1145_v50, 0.0  ;;  %1158 = vrsqrt.f32 %v1637_v15  ;;  %vm605_vm14 = vcmp.gt.f32.partialorder %v1637_v15, 0.0 }
 0x176   :  { %v1147_v54 = vpop.eup %1146  ;;  %v782_v52 = vmul.f32 0.0, %v635_v18  ;;  %v1648_v61 = vpop.xlane.xlu1 %586  ;;  %v812_v20 = vmul.f32 %v780_v13, %v1434_v57  ;;  %864 = vst.msk [vmem:[%s2001_s7 + $0x28] sm:$0xff] %vm278_vm0, %v1640_v17 }
 0x177   :  { %v684_v59 = vsel %vm652_vm8, %v1147_v54, 0.0  ;;  %1160 = vrsqrt.f32 %v1648_v61  ;;  %vm659_vm15 = vcmp.gt.f32.partialorder %v1648_v61, 0.0 }
 0x178   :  { %v1149_v22 = vpop.eup %1148  ;;  %v799_v24 = vmul.f32 0.0, %v684_v59  ;;  %v1657_v26 = vpop.xlane.xlu0 %577  ;;  %844 = vst.msk [vmem:[%s2002_s6 + $0x8] sm:$0xff] %vm278_vm0, %v812_v20  ;;  %v876_v57 = vmul.f32 %v828_v39, %v812_v20  ;;  %v814_v28 = vmul.f32 %v782_v52, %v1453_v5 }
 0x179   :  { %v687_v29 = vsel %vm655_vm9, %v1149_v22, 0.0  ;;  %1162 = vrsqrt.f32 %v1657_v26  ;;  %vm656_vm1 = vcmp.gt.f32.partialorder %v1657_v26, 0.0 }
 0x17a   :  { %v1151_v32 = vpop.eup %1150  ;;  %v802_v33 = vmul.f32 0.0, %v687_v29  ;;  %v1665_v37 = vpop.xlane.xlu1 %507  ;;  %v894_v34 = vsel %vm278_vm0, %v876_v57, 0.0  ;;  %846 = vst.msk [vmem:[%s2002_s6 + $0x18] sm:$0xff] %vm278_vm0, %v814_v28  ;;  %v878_v41 = vmul.f32 %v830_v46, %v814_v28  ;;  %v1673_v39 = vmul.f32 %v799_v24, %v1447_v1 }
 0x17b   :  { %v634_v5 = vsel %vm602_vm10, %v1151_v32, 0.0  ;;  %1164 = vrsqrt.f32 %v1665_v37  ;;  %895 = vadd.xlane.f32.xlu1 %v894_v34  ;;  %vm606_vm2 = vcmp.gt.f32.partialorder %v1665_v37, 0.0 }
 0x17c   :  { %v1153_v38 = vpop.eup %1152  ;;  %v781_v43 = vmul.f32 0.0, %v634_v5  ;;  %v1677_v48 = vpop.xlane.xlu0 %510  ;;  %v1680_v55 = vmul.f32 %v802_v33, %v1457_v8  ;;  %863 = vst.msk [vmem:[%s2001_s7 + $0x20] sm:$0xff] %vm278_vm0, %v1673_v39  ;;  %v900_v51 = vsel %vm278_vm0, %v878_v41, 0.0 }
 0x17d   :  { %v689_v1 = vsel %vm657_vm11, %v1153_v38, 0.0  ;;  %1166 = vrsqrt.f32 %v1677_v48  ;;  %vm607_vm3 = vcmp.gt.f32.partialorder %v1677_v48, 0.0 }
 0x17e   :  { %v1155_v60 = vpop.eup %1154  ;;  %v804_v62 = vmul.f32 0.0, %v689_v1  ;;  %v1689_v46 = vpop.xlane.xlu1 %592  ;;  %866 = vst.msk [vmem:[%s2001_s7 + $0x38] sm:$0xff] %vm278_vm0, %v1680_v55  ;;  %v1698_v8 = vmul.f32 %v781_v43, %v1465_v14 }
 0x17f   :  { %v686_v4 = vsel %vm654_vm12, %v1155_v60, 0.0  ;;  %1168 = vrsqrt.f32 %v1689_v46  ;;  %901 = vadd.xlane.f32.xlu1 %v900_v51  ;;  %vm661_vm4 = vcmp.gt.f32.partialorder %v1689_v46, 0.0 }
 0x180   :  { %v1157_v6 = vpop.eup %1156  ;;  %v801_v9 = vmul.f32 0.0, %v686_v4  ;;  %v1702_v63 = vpop.xlane.xlu0 %583  ;;  %v1705_v11 = vmul.f32 %v804_v62, %v1471_v19  ;;  %845 = vst.msk [vmem:[%s2002_s6 + $0x10] sm:$0xff] %vm278_vm0, %v1698_v8 }
 0x181   :  { %v636_v14 = vsel %vm604_vm13, %v1157_v6, 0.0  ;;  %1170 = vrsqrt.f32 %v1702_v63  ;;  %vm658_vm5 = vcmp.gt.f32.partialorder %v1702_v63, 0.0 }
 0x182   :  { %v1159_v50 = vpop.eup %1158  ;;  %v783_v13 = vmul.f32 0.0, %v636_v14  ;;  %v1714_v18 = vpop.xlane.xlu1 %513  ;;  %868 = vst.msk [vmem:[%s2001_s7 + $0x48] sm:$0xff] %vm278_vm0, %v1705_v11  ;;  %v1722_v19 = vmul.f32 %v801_v9, %v1474_v21 }
 0x183   :  { %v637_v10 = vsel %vm605_vm14, %v1159_v50, 0.0  ;;  %1172 = vrsqrt.f32 %v1714_v18  ;;  %vm608_vm6 = vcmp.gt.f32.partialorder %v1714_v18, 0.0 }
 0x184   :  { %v1161_v54 = vpop.eup %1160  ;;  %v784_v52 = vmul.f32 0.0, %v637_v10  ;;  %v1726_v20 = vpop.xlane.xlu0 %516  ;;  %v1729_v15 = vmul.f32 %v783_v13, %v1479_v25  ;;  %865 = vst.msk [vmem:[%s2001_s7 + $0x30] sm:$0xff] %vm278_vm0, %v1722_v19 }
 0x185   :  { %v691_v21 = vsel %vm659_vm15, %v1161_v54, 0.0  ;;  %1174 = vrsqrt.f32 %v1726_v20  ;;  %vm609_vm7 = vcmp.gt.f32.partialorder %v1726_v20, 0.0 }
 0x186   :  { %v1163_v59 = vpop.eup %1162  ;;  %v806_v22 = vmul.f32 0.0, %v691_v21  ;;  %v1738_v24 = vpop.xlane.xlu1 %598  ;;  %v816_v61 = vmul.f32 %v784_v52, %v1486_v30  ;;  %847 = vst.msk [vmem:[%s2002_s6 + $0x20] sm:$0xff] %vm278_vm0, %v1729_v15 }
 0x187   :  { %v688_v25 = vsel %vm656_vm1, %v1163_v59, 0.0  ;;  %1176 = vrsqrt.f32 %v1738_v24  ;;  %vm663_vm8 = vcmp.gt.f32.partialorder %v1738_v24, 0.0 }
 0x188   :  { %v1165_v57 = vpop.eup %1164  ;;  %v803_v28 = vmul.f32 0.0, %v688_v25  ;;  %v1748_v29 = vpop.xlane.xlu0 %589  ;;  %v880_v26 = vmul.f32 %v1640_v17, %v816_v61  ;;  %848 = vst.msk [vmem:[%s2002_s6 + $0x28] sm:$0xff] %vm278_vm0, %v816_v61  ;;  %v1756_v30 = vmul.f32 %v806_v22, %v1493_v35 }
 0x189   :  { %v638_v32 = vsel %vm606_vm2, %v1165_v57, 0.0  ;;  %1178 = vrsqrt.f32 %v1748_v29  ;;  %vm660_vm9 = vcmp.gt.f32.partialorder %v1748_v29, 0.0 }
 0x18a   :  { %v1167_v33 = vpop.eup %1166  ;;  %v785_v34 = vmul.f32 0.0, %v638_v32  ;;  %v1760_v37 = vpop.xlane.xlu1 %519  ;;  %v906_v41 = vsel %vm278_vm0, %v880_v26, 0.0  ;;  %870 = vst.msk [vmem:[%s2001_s7 + $0x58] sm:$0xff] %vm278_vm0, %v1756_v30  ;;  %v1769_v35 = vmul.f32 %v803_v28, %v1500_v40 }
 0x18b   :  { %v639_v17 = vsel %vm607_vm3, %v1167_v33, 0.0  ;;  %1180 = vrsqrt.f32 %v1760_v37  ;;  %907 = vadd.xlane.f32.xlu1 %v906_v41  ;;  %vm610_vm10 = vcmp.gt.f32.partialorder %v1760_v37, 0.0 }
 0x18c   :  { %v1169_v5 = vpop.eup %1168  ;;  %v786_v38 = vmul.f32 0.0, %v639_v17  ;;  %v1773_v43 = vpop.xlane.xlu0 %522  ;;  %v1776_v48 = vmul.f32 %v785_v34, %v1505_v45  ;;  %867 = vst.msk [vmem:[%s2001_s7 + $0x40] sm:$0xff] %vm278_vm0, %v1769_v35 }
 0x18d   :  { %v693_v40 = vsel %vm661_vm4, %v1169_v5, 0.0  ;;  %1182 = vrsqrt.f32 %v1773_v43  ;;  %vm611_vm11 = vcmp.gt.f32.partialorder %v1773_v43, 0.0  ;;  %vm955_vm4 = vcmask 7168  }
 0x18e   :  { %v1171_v1 = vpop.eup %1170  ;;  %v808_v60 = vmul.f32 0.0, %v693_v40  ;;  %v1785_v62 = vpop.xlane.xlu1 %525  ;;  %v818_v46 = vmul.f32 %v786_v38, %v1510_v53  ;;  %849 = vst.msk [vmem:[%s2002_s6 + $0x30] sm:$0xff] %vm278_vm0, %v1776_v48 }
 0x18f   :  { %v690_v45 = vsel %vm658_vm5, %v1171_v1, 0.0  ;;  %1184 = vrsqrt.f32 %v1785_v62  ;;  %vm612_vm12 = vcmp.gt.f32.partialorder %v1785_v62, 0.0 }
 0x190   :  { %v1173_v51 = vpop.eup %1172  ;;  %v805_v4 = vmul.f32 0.0, %v690_v45  ;;  %v1795_v6 = vpop.xlane.xlu0 %595  ;;  %v882_v9 = vmul.f32 %v1680_v55, %v818_v46  ;;  %850 = vst.msk [vmem:[%s2002_s6 + $0x38] sm:$0xff] %vm278_vm0, %v818_v46  ;;  %v1803_v53 = vmul.f32 %v808_v60, %v1515_v58 }
 0x191   :  { %v640_v63 = vsel %vm608_vm6, %v1173_v51, 0.0  ;;  %1186 = vrsqrt.f32 %v1795_v6  ;;  %vm662_vm13 = vcmp.gt.f32.partialorder %v1795_v6, 0.0 }
 0x192   :  { %v1175_v14 = vpop.eup %1174  ;;  %v787_v50 = vmul.f32 0.0, %v640_v63  ;;  %v532_v13 = vpop.xlane.xlu1 %531  ;;  %v912_v18 = vsel %vm278_vm0, %v882_v9, 0.0  ;;  %872 = vst.msk [vmem:[%s2001_s7 + $0x68] sm:$0xff] %vm278_vm0, %v1803_v53  ;;  %v1814_v55 = vmul.f32 %v805_v4, %v1524_v3 }
 0x193   :  { %v641_v58 = vsel %vm609_vm7, %v1175_v14, 0.0  ;;  %1188 = vrsqrt.f32 %v532_v13  ;;  %913 = vadd.xlane.f32.xlu1 %v912_v18  ;;  %vm614_vm14 = vcmp.gt.f32.partialorder %v532_v13, 0.0 }
 0x194   :  { %v1177_v10 = vpop.eup %1176  ;;  %v788_v54 = vmul.f32 0.0, %v641_v58  ;;  %v529_v52 = vpop.xlane.xlu0 %528  ;;  %v1818_v20 = vmul.f32 %v787_v50, %v1529_v7  ;;  %869 = vst.msk [vmem:[%s2001_s7 + $0x50] sm:$0xff] %vm278_vm0, %v1814_v55 }
 0x195   :  { %v695_v21 = vsel %vm663_vm8, %v1177_v10, 0.0  ;;  %1190 = vrsqrt.f32 %v529_v52  ;;  %vm613_vm15 = vcmp.gt.f32.partialorder %v529_v52, 0.0 }
 0x196   :  { %v1179_v3 = vpop.eup %1178  ;;  %v810_v59 = vmul.f32 0.0, %v695_v21  ;;  %v554_v22 = vpop.xlane.xlu1 %553  ;;  %v820_v61 = vmul.f32 %v788_v54, %v1534_v12  ;;  %851 = vst.msk [vmem:[%s2002_s6 + $0x40] sm:$0xff] %vm278_vm0, %v1818_v20 }
 0x197   :  { %v692_v7 = vsel %vm660_vm9, %v1179_v3, 0.0  ;;  %1192 = vrsqrt.f32 %v554_v22  ;;  %vm648_vm1 = vcmp.gt.f32.partialorder %v554_v22, 0.0 }
 0x198   :  { %v1181_v24 = vpop.eup %1180  ;;  %v807_v25 = vmul.f32 0.0, %v692_v7  ;;  %v535_v57 = vpop.xlane.xlu0 %534  ;;  %v884_v28 = vmul.f32 %v1705_v11, %v820_v61  ;;  %852 = vst.msk [vmem:[%s2002_s6 + $0x48] sm:$0xff] %vm278_vm0, %v820_v61  ;;  %v1839_v12 = vmul.f32 %v810_v59, %v1539_v16  ;;  %v879_v59 = vmul.f32 %v1673_v39, %v1729_v15 }
 0x199   :  { %v642_v29 = vsel %vm610_vm10, %v1181_v24, 0.0  ;;  %1194 = vrsqrt.f32 %v535_v57  ;;  %vm615_vm2 = vcmp.gt.f32.partialorder %v535_v57, 0.0  ;;  %v881_v61 = vmul.f32 %v1722_v19, %v1776_v48 }
 0x19a   :  { %v1183_v26 = vpop.eup %1182  ;;  %v789_v32 = vmul.f32 0.0, %v642_v29  ;;  %v918_v33 = vsel %vm278_vm0, %v884_v28, 0.0  ;;  %874 = vst.msk [vmem:[%s2001_s7 + $0x78] sm:$0xff] %vm278_vm0, %v1839_v12  ;;  %v1849_v11 = vmul.f32 %v807_v25, %v1548_v23  ;;  %v903_v22 = vsel %vm278_vm0, %v879_v59, 0.0 }
 0x19b   :  { %v643_v34 = vsel %vm611_vm11, %v1183_v26, 0.0  ;;  %919 = vadd.xlane.f32.xlu1 %v918_v33  ;;  %v909_v7 = vsel %vm278_vm0, %v881_v61, 0.0  ;;  %v883_v24 = vmul.f32 %v1769_v35, %v1818_v20 }
 0x19c   :  { %v1185_v16 = vpop.eup %1184  ;;  %v790_v37 = vmul.f32 0.0, %v643_v34  ;;  %v490_v41 = vpop.xlane.xlu0 %489  ;;  %v1853_v17 = vmul.f32 %v789_v32, %v1553_v27  ;;  %871 = vst.msk [vmem:[%s2001_s7 + $0x60] sm:$0xff] %vm278_vm0, %v1849_v11 }
 0x19d   :  { %v644_v5 = vsel %vm612_vm12, %v1185_v16, 0.0  ;;  %1196 = vrsqrt.f32 %v490_v41  ;;  %vm600_vm3 = vcmp.gt.f32.partialorder %v490_v41, 0.0 }
 0x19e   :  { %v1187_v23 = vpop.eup %1186  ;;  %v791_v38 = vmul.f32 0.0, %v644_v5  ;;  %v822_v43 = vmul.f32 %v790_v37, %v1558_v31  ;;  %853 = vst.msk [vmem:[%s2002_s6 + $0x50] sm:$0xff] %vm278_vm0, %v1853_v17 }
 0x19f   :  { %v694_v27 = vsel %vm662_vm13, %v1187_v23, 0.0 }
 0x1a0   :  { %v1189_v40 = vpop.eup %1188  ;;  %v809_v1 = vmul.f32 0.0, %v694_v27  ;;  %v886_v60 = vmul.f32 %v1756_v30, %v822_v43  ;;  %854 = vst.msk [vmem:[%s2002_s6 + $0x58] sm:$0xff] %vm278_vm0, %v822_v43  ;;  %v823_v62 = vmul.f32 %v791_v38, %v1563_v36 }
 0x1a1   :  { %v646_v31 = vsel %vm614_vm14, %v1189_v40, 0.0 }
 0x1a2   :  { %v1191_v46 = vpop.eup %1190  ;;  %v793_v45 = vmul.f32 0.0, %v646_v31  ;;  %v924_v51 = vsel %vm278_vm0, %v886_v60, 0.0  ;;  %855 = vst.msk [vmem:[%s2002_s6 + $0x60] sm:$0xff] %vm278_vm0, %v823_v62  ;;  %v841_v30 = vmul.f32 %v809_v1, %v1572_v42  ;;  %v887_v15 = vmul.f32 %v1849_v11, %v823_v62 }
 0x1a3   :  { %v645_v4 = vsel %vm613_vm15, %v1191_v46, 0.0  ;;  %925 = vadd.xlane.f32.xlu1 %v924_v51 }
 0x1a4   :  { %v1193_v6 = vpop.eup %1192  ;;  %v792_v9 = vmul.f32 0.0, %v645_v4  ;;  %v825_v36 = vmul.f32 %v793_v45, %v1577_v49  ;;  %873 = vst.msk [vmem:[%s2001_s7 + $0x70] sm:$0xff] %vm278_vm0, %v841_v30  ;;  %v927_v19 = vsel %vm278_vm0, %v887_v15, 0.0 }
 0x1a5   :  { %v680_v63 = vsel %vm648_vm1, %v1193_v6, 0.0 }
 0x1a6   :  { %v1195_v14 = vpop.eup %1194  ;;  %v827_v50 = vmul.f32 %v680_v63, %v1592_v0  ;;  %v824_v13 = vmul.f32 %v792_v9, %v1583_v56  ;;  %857 = vst.msk [vmem:[%s2002_s6 + $0x70] sm:$0xff] %vm278_vm0, %v825_v36  ;;  %v889_v48 = vmul.f32 %v841_v30, %v825_v36 }
 0x1a7   :  { %v647_v42 = vsel %vm615_vm2, %v1195_v14, 0.0 }
 0x1a8   :  { %859 = vst.msk [vmem:[%s2001_s7] sm:$0xff] %vm278_vm0, %v827_v50  ;;  %v794_v49 = vmul.f32 0.0, %v647_v42  ;;  %v888_v18 = vmul.f32 %v1803_v53, %v824_v13  ;;  %856 = vst.msk [vmem:[%s2002_s6 + $0x68] sm:$0xff] %vm278_vm0, %v824_v13  ;;  %v933_v25 = vsel %vm278_vm0, %v889_v48, 0.0 }
 0x1aa   :  { %v1197_v56 = vpop.eup %1196  ;;  %v930_v0 = vsel %vm278_vm0, %v888_v18, 0.0  ;;  %v826_v58 = vmul.f32 %v794_v49, %v1595_v2 }
 0x1ab   :  { %v632_v10 = vsel %vm600_vm3, %v1197_v56, 0.0  ;;  %931 = vadd.xlane.f32.xlu1 %v930_v0 }
 0x1ac   :  { %v811_v54 = vmul.f32 %v632_v10, %v1605_v44  ;;  %v890_v52 = vmul.f32 %v1839_v12, %v826_v58  ;;  %858 = vst.msk [vmem:[%s2002_s6 + $0x78] sm:$0xff] %vm278_vm0, %v826_v58  ;;  %v877_v44 = vmul.f32 %v1634_v47, %v1698_v8  ;;  %v915_v47 = vsel %vm278_vm0, %v883_v24, 0.0 }
 0x1ad   :  { %v885_v8 = vmul.f32 %v1814_v55, %v1853_v17 }
 0x1ae   :  { %843 = vst.msk [vmem:[%s2002_s6] sm:$0xff] %vm278_vm0, %v811_v54  ;;  %v936_v53 = vsel %vm278_vm0, %v890_v52, 0.0  ;;  %v875_v21 = vmul.f32 %v827_v50, %v811_v54  ;;  %v897_v3 = vsel %vm278_vm0, %v877_v44, 0.0 }
 0x1af   :  { %937 = vadd.xlane.f32.xlu1 %v936_v53  ;;  %v921_v39 = vsel %vm278_vm0, %v885_v8, 0.0 }
 0x1b0   :  { %v891_v2 = vsel %vm278_vm0, %v875_v21, 0.0 }
 0x1b1   :  { %892 = vadd.xlane.f32.xlu0 %v891_v2 }
 0x1b5   :  { %898 = vadd.xlane.f32.xlu0 %v897_v3 }
 0x1b9   :  { %904 = vadd.xlane.f32.xlu0 %v903_v22 }
 0x1bd   :  { %910 = vadd.xlane.f32.xlu0 %v909_v7 }
 0x1c1   :  { %916 = vadd.xlane.f32.xlu0 %v915_v47 }
 0x1c5   :  { %922 = vadd.xlane.f32.xlu0 %v921_v39 }
 0x1c9   :  { %928 = vadd.xlane.f32.xlu0 %v927_v19 }
 0x1cd   :  { %934 = vadd.xlane.f32.xlu0 %v933_v25 }
 0x204   :  { %v896_v35 = vpop.xlane.xlu1 %895 }
 0x205   :  { %v940_v20 = vand.u32 2147483647, %v896_v35 }
 0x207   :  { %957 = vst.msk [vmem:[%s2003_s8 + $0x8] sm:$0xff] %vm955_vm4, %v940_v20 }
 0x208   :  { %v902_v55 = vpop.xlane.xlu1 %901 }
 0x209   :  { %v942_v57 = vand.u32 2147483647, %v902_v55 }
 0x20b   :  { %959 = vst.msk [vmem:[%s2003_s8 + $0x18] sm:$0xff] %vm955_vm4, %v942_v57 }
 0x214   :  { %v908_v28 = vpop.xlane.xlu1 %907 }
 0x215   :  { %v944_v12 = vand.u32 2147483647, %v908_v28 }
 0x217   :  { %961 = vst.msk [vmem:[%s2003_s8 + $0x28] sm:$0xff] %vm955_vm4, %v944_v12 }
 0x21c   :  { %v914_v29 = vpop.xlane.xlu1 %913 }
 0x21d   :  { %v946_v26 = vand.u32 2147483647, %v914_v29 }
 0x21f   :  { %963 = vst.msk [vmem:[%s2003_s8 + $0x38] sm:$0xff] %vm955_vm4, %v946_v26 }
 0x224   :  { %v920_v32 = vpop.xlane.xlu1 %919 }
 0x225   :  { %v948_v33 = vand.u32 2147483647, %v920_v32 }
 0x227   :  { %965 = vst.msk [vmem:[%s2003_s8 + $0x48] sm:$0xff] %vm955_vm4, %v948_v33 }
 0x22c   :  { %v926_v11 = vpop.xlane.xlu1 %925 }
 0x22d   :  { %v950_v34 = vand.u32 2147483647, %v926_v11 }
 0x22f   :  { %967 = vst.msk [vmem:[%s2003_s8 + $0x58] sm:$0xff] %vm955_vm4, %v950_v34 }
 0x234   :  { %v932_v16 = vpop.xlane.xlu1 %931 }
 0x235   :  { %v952_v37 = vand.u32 2147483647, %v932_v16 }
 0x237   :  { %969 = vst.msk [vmem:[%s2003_s8 + $0x68] sm:$0xff] %vm955_vm4, %v952_v37 }
 0x238   :  { %v938_v41 = vpop.xlane.xlu1 %937 }
 0x239   :  { %v954_v17 = vand.u32 2147483647, %v938_v41 }
 0x23a   :  { %v893_v5 = vpop.xlane.xlu0 %892 }
 0x23b   :  { %971 = vst.msk [vmem:[%s2003_s8 + $0x78] sm:$0xff] %vm955_vm4, %v954_v17  ;;  %v939_v23 = vand.u32 2147483647, %v893_v5 }
 0x23d   :  { %956 = vst.msk [vmem:[%s2003_s8] sm:$0xff] %vm955_vm4, %v939_v23 }
 0x23e   :  { %v899_v38 = vpop.xlane.xlu0 %898 }
 0x23f   :  { %v941_v43 = vand.u32 2147483647, %v899_v38 }
 0x241   :  { %958 = vst.msk [vmem:[%s2003_s8 + $0x10] sm:$0xff] %vm955_vm4, %v941_v43 }
 0x242   :  { %v905_v27 = vpop.xlane.xlu0 %904 }
 0x243   :  { %v943_v40 = vand.u32 2147483647, %v905_v27 }
 0x245   :  { %960 = vst.msk [vmem:[%s2003_s8 + $0x20] sm:$0xff] %vm955_vm4, %v943_v40 }
 0x246   :  { %v911_v1 = vpop.xlane.xlu0 %910 }
 0x247   :  { %v945_v60 = vand.u32 2147483647, %v911_v1 }
 0x249   :  { %962 = vst.msk [vmem:[%s2003_s8 + $0x30] sm:$0xff] %vm955_vm4, %v945_v60 }
 0x24a   :  { %v917_v62 = vpop.xlane.xlu0 %916 }
 0x24b   :  { %v947_v31 = vand.u32 2147483647, %v917_v62 }
 0x24d   :  { %964 = vst.msk [vmem:[%s2003_s8 + $0x40] sm:$0xff] %vm955_vm4, %v947_v31 }
 0x24e   :  { %v923_v46 = vpop.xlane.xlu0 %922 }
 0x24f   :  { %v949_v45 = vand.u32 2147483647, %v923_v46 }
 0x251   :  { %966 = vst.msk [vmem:[%s2003_s8 + $0x50] sm:$0xff] %vm955_vm4, %v949_v45 }
 0x252   :  { %v929_v51 = vpop.xlane.xlu0 %928 }
 0x253   :  { %v951_v30 = vand.u32 2147483647, %v929_v51 }
 0x255   :  { %968 = vst.msk [vmem:[%s2003_s8 + $0x60] sm:$0xff] %vm955_vm4, %v951_v30 }
 0x256   :  { %v935_v4 = vpop.xlane.xlu0 %934 }
 0x257   :  { %v953_v6 = vand.u32 2147483647, %v935_v4 }
 0x259   :  { %970 = vst.msk [vmem:[%s2003_s8 + $0x70] sm:$0xff] %vm955_vm4, %v953_v6 }

</bundles_post_ra>
